<compile_context>
chip_gen: v5e
topology: v5e:2x2
jax: 0.10.0
libtpu: 0.0.40
codegen_flags: <defaults>
</compile_context>

<pallas_src>
import functools

import jax
import jax.numpy as jnp
from jax import lax
from jax.experimental import pallas as pl
from jax.experimental.pallas import tpu as pltpu


# ---------------------------------------------------------------------------
# Phase 1: bulk x -> hidden-preactivation projection (one MXU-friendly matmul
# with M = T*B rows instead of a tiny per-step dot on the serial path).
# ---------------------------------------------------------------------------
def _xproj_kernel(x_ref, w_ref, b_ref, o_ref):
    o_ref[...] = (
        jnp.dot(x_ref[...], w_ref[...], preferred_element_type=jnp.float32)
        + b_ref[...]
    ).astype(o_ref.dtype)


def x_projection(x_flat, w_xh, b_h):
    tb, v = x_flat.shape
    h = w_xh.shape[1]
    return pl.pallas_call(
        _xproj_kernel,
        out_shape=jax.ShapeDtypeStruct((tb, h), jnp.float32),
        grid=(1,),
        in_specs=[
            pl.BlockSpec((tb, v), lambda i: (0, 0)),
            pl.BlockSpec((v, h), lambda i: (0, 0)),
            pl.BlockSpec((1, h), lambda i: (0, 0)),
        ],
        out_specs=pl.BlockSpec((tb, h), lambda i: (0, 0)),
    )(x_flat, w_xh, b_h)


# ---------------------------------------------------------------------------
# Phase 3: bulk output projection, computed after the recurrence:
#   out_t = x_t @ W_xo + h_{t-1} @ W_ho + b_o
# (moves ~V/(H+V) of the recurrent FLOPs off the serial critical path).
# ---------------------------------------------------------------------------
def _outproj_kernel(x_ref, hp_ref, wxo_ref, who_ref, b_ref, o_ref):
    o_ref[...] = (
        jnp.dot(x_ref[...], wxo_ref[...], preferred_element_type=jnp.float32)
        + jnp.dot(hp_ref[...], who_ref[...], preferred_element_type=jnp.float32)
        + b_ref[...]
    ).astype(o_ref.dtype)


def output_projection(x_flat, hprev_flat, w_xo, w_ho, b_o, out_dtype):
    tb, v = x_flat.shape
    h = hprev_flat.shape[1]
    return pl.pallas_call(
        _outproj_kernel,
        out_shape=jax.ShapeDtypeStruct((tb, v), out_dtype),
        grid=(1,),
        in_specs=[
            pl.BlockSpec((tb, v), lambda i: (0, 0)),
            pl.BlockSpec((tb, h), lambda i: (0, 0)),
            pl.BlockSpec((v, v), lambda i: (0, 0)),
            pl.BlockSpec((h, v), lambda i: (0, 0)),
            pl.BlockSpec((1, v), lambda i: (0, 0)),
        ],
        out_specs=pl.BlockSpec((tb, v), lambda i: (0, 0)),
    )(x_flat, hprev_flat, w_xo, w_ho, b_o)


# ---------------------------------------------------------------------------
# Phase 2: serial recurrence.  One grid step == one chunk of Tc time steps.
# Only new_h = sigmoid(xproj_hid[t] + h @ W_hh) stays on the serial path.
# ---------------------------------------------------------------------------
def _recurrence_kernel(xh_ref, h0_ref, whh_ref, hprev_ref, hfin_ref, h_scr,
                       *, tc):
    c = pl.program_id(0)

    # Initialize the carried hidden state on the very first chunk.
    @pl.when(c == 0)
    def _():
        h_scr[...] = h0_ref[...].astype(jnp.float32)

    def step(t, carry):
        h = h_scr[...]                                   # (B, H), f32
        hprev_ref[t] = h.astype(hprev_ref.dtype)          # h_{t-1} for output proj
        pre = xh_ref[t].astype(jnp.float32) + jnp.dot(
            h, whh_ref[...], preferred_element_type=jnp.float32)
        h_scr[...] = jax.nn.sigmoid(pre)
        return carry

    # Small fixed trip count -> fully unrolled for LLO scheduler visibility.
    lax.fori_loop(0, tc, step, 0, unroll=True)

    # Final-hidden store only on the last chunk (all earlier writes are dead).
    @pl.when(c == pl.num_programs(0) - 1)
    def _():
        hfin_ref[...] = h_scr[...].astype(hfin_ref.dtype)


def _pick_chunk(t, target=32):
    """Largest chunk size <= target that divides T."""
    tc = min(t, target)
    while t % tc:
        tc -= 1
    return tc


def prepare_params(w_ih, b_ih, w_io, b_io):
    """One-time parameter re-layout (hoisted out of any stepping loop).

    PyTorch nn.Linear convention: w_ih (H, V+H), w_io (V, V+H); combined
    feature order is [x (V), h (H)].  Returns (in, out)-layout splits:
      w_xh (V, H), w_hh (H, H), w_xo (V, V), w_ho (H, V), b_h (1, H), b_o (1, V)
    """
    w_ih = jnp.asarray(w_ih, jnp.float32)
    w_io = jnp.asarray(w_io, jnp.float32)
    H = w_ih.shape[0]
    V = w_io.shape[0]
    w_xh = w_ih[:, :V].T          # (V, H)
    w_hh = w_ih[:, V:].T          # (H, H)
    w_xo = w_io[:, :V].T          # (V, V)
    w_ho = w_io[:, V:].T          # (H, V)
    b_h = jnp.asarray(b_ih, jnp.float32).reshape(1, H)
    b_o = jnp.asarray(b_io, jnp.float32).reshape(1, V)
    return w_xh, w_hh, w_xo, w_ho, b_h, b_o


@jax.jit
def rnn_forward_sequence(x_seq, h0, w_xh, w_hh, w_xo, w_ho, b_h, b_o):
    """Run the RNN cell over a whole sequence.

    x_seq: (T, B, V), h0: (B, H).
    Returns (outputs (T, B, V), final hidden (B, H)).
    """
    T, B, V = x_seq.shape
    H = h0.shape[1]
    tc = _pick_chunk(T)
    n_chunks = T // tc

    x_flat = x_seq.reshape(T * B, V)

    # Phase 1: bulk x-projection for the recurrence.
    xproj_hid = x_projection(x_flat, w_xh, b_h).reshape(T, B, H)

    # Phase 2: serial recurrence (chunked time grid, hidden carried in VMEM).
    kernel = functools.partial(_recurrence_kernel, tc=tc)
    h_prev, h_final = pl.pallas_call(
        kernel,
        out_shape=(
            jax.ShapeDtypeStruct((T, B, H), jnp.float32),  # h_{t-1} for each t
            jax.ShapeDtypeStruct((B, H), x_seq.dtype),     # final hidden state
        ),
        grid=(n_chunks,),
        in_specs=[
            pl.BlockSpec((tc, B, H), lambda c: (c, 0, 0)),  # xproj_hid chunk
            pl.BlockSpec((B, H), lambda c: (0, 0)),         # h0 (read at c == 0)
            pl.BlockSpec((H, H), lambda c: (0, 0)),         # W_hh: resident in VMEM
        ],
        out_specs=(
            pl.BlockSpec((tc, B, H), lambda c: (c, 0, 0)),
            pl.BlockSpec((B, H), lambda c: (0, 0)),
        ),
        scratch_shapes=[pltpu.VMEM((B, H), jnp.float32)],   # carried hidden state
        compiler_params=pltpu.CompilerParams(
            dimension_semantics=("arbitrary",)),            # recurrence: sequential
    )(xproj_hid, h0, w_hh)

    # Phase 3: bulk output projection (off the serial critical path).
    out_flat = output_projection(x_flat, h_prev.reshape(T * B, H),
                                 w_xo, w_ho, b_o, x_seq.dtype)
    return out_flat.reshape(T, B, V), h_final


def rnn_forward(x, hidden_state, w_xh, w_hh, w_xo, w_ho, b_h, b_o):
    """Single RNN step matching RNN.forward(): returns (output, new_hidden)."""
    out_seq, new_h = rnn_forward_sequence(
        x[None], hidden_state, w_xh, w_hh, w_xo, w_ho, b_h, b_o)
    return out_seq[0], new_h


def init_hidden(batch, hidden_size, dtype=jnp.float32):
    # Mirrors RNN.init_hidden() (zeros), generalized to a batch dimension.
    return jnp.zeros((batch, hidden_size), dtype=dtype)


if __name__ == "__main__":
    vocab_size = 32          # input_size == output_size == vocab_size
    hidden_state_size = 14   # matches the PyTorch script
    batch = 2
    seq_len = 8

    key = jax.random.PRNGKey(0)
    k_x, k_wih, k_bih, k_wio, k_bio = jax.random.split(key, 5)

    fan_in = vocab_size + hidden_state_size
    bound = 1.0 / jnp.sqrt(fan_in)
    w_ih = jax.random.uniform(k_wih, (hidden_state_size, fan_in),
                              jnp.float32, -bound, bound)
    b_ih = jax.random.uniform(k_bih, (hidden_state_size,),
                              jnp.float32, -bound, bound)
    w_io = jax.random.uniform(k_wio, (vocab_size, fan_in),
                              jnp.float32, -bound, bound)
    b_io = jax.random.uniform(k_bio, (vocab_size,),
                              jnp.float32, -bound, bound)

    # One-time parameter re-layout (hoisted out of any stepping loop).
    params = prepare_params(w_ih, b_ih, w_io, b_io)

    # A short character sequence batch.
    x_seq = jax.random.uniform(k_x, (seq_len, batch, vocab_size), jnp.float32)
    h0 = init_hidden(batch, hidden_state_size)

    # --- Fused-sequence kernels -----------------------------------------------
    out_seq, h_final = rnn_forward_sequence(x_seq, h0, *params)
    jax.block_until_ready((out_seq, h_final))

    # Pure-JAX reference: step the PyTorch-equivalent cell in a Python loop.
    h_ref = h0
    outs_ref = []
    for t in range(seq_len):
        combined = jnp.concatenate([x_seq[t], h_ref], axis=1)
        outs_ref.append(combined @ w_io.T + b_io)       # uses h_{t-1}
        h_ref = jax.nn.sigmoid(combined @ w_ih.T + b_ih)
    out_seq_ref = jnp.stack(outs_ref)

    assert out_seq.shape == (seq_len, batch, vocab_size)
    assert h_final.shape == (batch, hidden_state_size)
    assert jnp.allclose(out_seq, out_seq_ref, atol=1e-4, rtol=1e-4)
    assert jnp.allclose(h_final, h_ref, atol=1e-4, rtol=1e-4)

    # --- Single-step API (matches RNN.forward exactly) ------------------------
    out1, hid1 = rnn_forward(x_seq[0], h0, *params)
    jax.block_until_ready((out1, hid1))
    combined0 = jnp.concatenate([x_seq[0], h0], axis=1)
    ref_hid1 = jax.nn.sigmoid(combined0 @ w_ih.T + b_ih)
    ref_out1 = combined0 @ w_io.T + b_io
    assert jnp.allclose(out1, ref_out1, atol=1e-4, rtol=1e-4)
    assert jnp.allclose(hid1, ref_hid1, atol=1e-4, rtol=1e-4)

    print("KERNEL_OK")
</pallas_src>

<mosaic_0001>
module attributes {stable_mosaic.version = 11 : i64} {
  func.func @_outproj_kernel(%arg0: i32, %arg1: memref<16x32xf32, #tpu.memory_space<vmem>>, %arg2: memref<16x14xf32, #tpu.memory_space<vmem>>, %arg3: memref<32x32xf32, #tpu.memory_space<vmem>>, %arg4: memref<14x32xf32, #tpu.memory_space<vmem>>, %arg5: memref<1x32xf32, #tpu.memory_space<vmem>>, %arg6: memref<16x32xf32, #tpu.memory_space<vmem>>) attributes {dimension_semantics = [#tpu.dimension_semantics<arbitrary>], iteration_bounds = array<i64: 1>, scalar_prefetch = 0 : i64, scratch_operands = 0 : i64, tpu.core_type = #tpu.core_type<tc>, window_params = [{pipeline_mode = #tpu.pipeline_mode<synchronous>, transform_indices = @transform_0, window_bounds = array<i64: 16, 32>}, {pipeline_mode = #tpu.pipeline_mode<synchronous>, transform_indices = @transform_1, window_bounds = array<i64: 16, 14>}, {pipeline_mode = #tpu.pipeline_mode<synchronous>, transform_indices = @transform_2, window_bounds = array<i64: 32, 32>}, {pipeline_mode = #tpu.pipeline_mode<synchronous>, transform_indices = @transform_3, window_bounds = array<i64: 14, 32>}, {pipeline_mode = #tpu.pipeline_mode<synchronous>, transform_indices = @transform_4, window_bounds = array<i64: 1, 32>}, {pipeline_mode = #tpu.pipeline_mode<synchronous>, transform_indices = @transform_5, window_bounds = array<i64: 16, 32>}]} {
    %c0 = arith.constant 0 : index
    %c0_0 = arith.constant 0 : index
    %0 = vector.load %arg1[%c0, %c0_0] : memref<16x32xf32, #tpu.memory_space<vmem>>, vector<16x32xf32>
    %c0_1 = arith.constant 0 : index
    %c0_2 = arith.constant 0 : index
    %1 = vector.load %arg3[%c0_1, %c0_2] : memref<32x32xf32, #tpu.memory_space<vmem>>, vector<32x32xf32>
    %cst = arith.constant dense<0.000000e+00> : vector<16x32xf32>
    %2 = tpu.matmul %0, %1, %cst {dimension_numbers = #tpu.dot_dimension_numbers<[1], [0], [0], [1], [0, 0, 1, 1], [], []>} : vector<16x32xf32>, vector<32x32xf32>, vector<16x32xf32> -> vector<16x32xf32>
    %c0_3 = arith.constant 0 : index
    %c0_4 = arith.constant 0 : index
    %3 = vector.load %arg2[%c0_3, %c0_4] : memref<16x14xf32, #tpu.memory_space<vmem>>, vector<16x14xf32>
    %c0_5 = arith.constant 0 : index
    %c0_6 = arith.constant 0 : index
    %4 = vector.load %arg4[%c0_5, %c0_6] : memref<14x32xf32, #tpu.memory_space<vmem>>, vector<14x32xf32>
    %cst_7 = arith.constant dense<0.000000e+00> : vector<16x32xf32>
    %5 = tpu.matmul %3, %4, %cst_7 {dimension_numbers = #tpu.dot_dimension_numbers<[1], [0], [0], [1], [0, 0, 1, 1], [], []>} : vector<16x14xf32>, vector<14x32xf32>, vector<16x32xf32> -> vector<16x32xf32>
    %6 = arith.addf %2, %5 : vector<16x32xf32>
    %c0_8 = arith.constant 0 : index
    %c0_9 = arith.constant 0 : index
    %7 = vector.load %arg5[%c0_8, %c0_9] : memref<1x32xf32, #tpu.memory_space<vmem>>, vector<1x32xf32>
    %8 = vector.broadcast %7 : vector<1x32xf32> to vector<16x32xf32>
    %9 = arith.addf %6, %8 : vector<16x32xf32>
    %c0_10 = arith.constant 0 : index
    %c0_11 = arith.constant 0 : index
    %10 = vector.load %arg6[%c0_10, %c0_11] : memref<16x32xf32, #tpu.memory_space<vmem>>, vector<16x32xf32>
    tpu.vector_store %arg6[%c0_10, %c0_11], %9 {strides = array<i32>} : memref<16x32xf32, #tpu.memory_space<vmem>>, vector<16x32xf32>,
    return
  }
  func.func @transform_0(%arg0: i32) -> (i32, i32) {
    %c0_i32 = arith.constant 0 : i32
    %c0_i32_0 = arith.constant 0 : i32
    %c0_i32_1 = arith.constant 0 : i32
    return %c0_i32, %c0_i32_0 : i32, i32
  }
  func.func @transform_1(%arg0: i32) -> (i32, i32) {
    %c0_i32 = arith.constant 0 : i32
    %c0_i32_0 = arith.constant 0 : i32
    %c0_i32_1 = arith.constant 0 : i32
    return %c0_i32, %c0_i32_0 : i32, i32
  }
  func.func @transform_2(%arg0: i32) -> (i32, i32) {
    %c0_i32 = arith.constant 0 : i32
    %c0_i32_0 = arith.constant 0 : i32
    %c0_i32_1 = arith.constant 0 : i32
    return %c0_i32, %c0_i32_0 : i32, i32
  }
  func.func @transform_3(%arg0: i32) -> (i32, i32) {
    %c0_i32 = arith.constant 0 : i32
    %c0_i32_0 = arith.constant 0 : i32
    %c0_i32_1 = arith.constant 0 : i32
    return %c0_i32, %c0_i32_0 : i32, i32
  }
  func.func @transform_4(%arg0: i32) -> (i32, i32) {
    %c0_i32 = arith.constant 0 : i32
    %c0_i32_0 = arith.constant 0 : i32
    %c0_i32_1 = arith.constant 0 : i32
    return %c0_i32, %c0_i32_0 : i32, i32
  }
  func.func @transform_5(%arg0: i32) -> (i32, i32) {
    %c0_i32 = arith.constant 0 : i32
    %c0_i32_0 = arith.constant 0 : i32
    %c0_i32_1 = arith.constant 0 : i32
    return %c0_i32, %c0_i32_0 : i32, i32
  }
}

module attributes {stable_mosaic.version = 11 : i64} {
  func.func @_xproj_kernel(%arg0: i32, %arg1: memref<16x32xf32, #tpu.memory_space<vmem>>, %arg2: memref<32x14xf32, #tpu.memory_space<vmem>>, %arg3: memref<1x14xf32, #tpu.memory_space<vmem>>, %arg4: memref<16x14xf32, #tpu.memory_space<vmem>>) attributes {dimension_semantics = [#tpu.dimension_semantics<arbitrary>], iteration_bounds = array<i64: 1>, scalar_prefetch = 0 : i64, scratch_operands = 0 : i64, tpu.core_type = #tpu.core_type<tc>, window_params = [{pipeline_mode = #tpu.pipeline_mode<synchronous>, transform_indices = @transform_0, window_bounds = array<i64: 16, 32>}, {pipeline_mode = #tpu.pipeline_mode<synchronous>, transform_indices = @transform_1, window_bounds = array<i64: 32, 14>}, {pipeline_mode = #tpu.pipeline_mode<synchronous>, transform_indices = @transform_2, window_bounds = array<i64: 1, 14>}, {pipeline_mode = #tpu.pipeline_mode<synchronous>, transform_indices = @transform_3, window_bounds = array<i64: 16, 14>}]} {
    %c0 = arith.constant 0 : index
    %c0_0 = arith.constant 0 : index
    %0 = vector.load %arg1[%c0, %c0_0] : memref<16x32xf32, #tpu.memory_space<vmem>>, vector<16x32xf32>
    %c0_1 = arith.constant 0 : index
    %c0_2 = arith.constant 0 : index
    %1 = vector.load %arg2[%c0_1, %c0_2] : memref<32x14xf32, #tpu.memory_space<vmem>>, vector<32x14xf32>
    %cst = arith.constant dense<0.000000e+00> : vector<16x14xf32>
    %2 = tpu.matmul %0, %1, %cst {dimension_numbers = #tpu.dot_dimension_numbers<[1], [0], [0], [1], [0, 0, 1, 1], [], []>} : vector<16x32xf32>, vector<32x14xf32>, vector<16x14xf32> -> vector<16x14xf32>
    %c0_3 = arith.constant 0 : index
    %c0_4 = arith.constant 0 : index
    %3 = vector.load %arg3[%c0_3, %c0_4] : memref<1x14xf32, #tpu.memory_space<vmem>>, vector<1x14xf32>
    %4 = vector.broadcast %3 : vector<1x14xf32> to vector<16x14xf32>
    %5 = arith.addf %2, %4 : vector<16x14xf32>
    %c0_5 = arith.constant 0 : index
    %c0_6 = arith.constant 0 : index
    %6 = vector.load %arg4[%c0_5, %c0_6] : memref<16x14xf32, #tpu.memory_space<vmem>>, vector<16x14xf32>
    tpu.vector_store %arg4[%c0_5, %c0_6], %5 {strides = array<i32>} : memref<16x14xf32, #tpu.memory_space<vmem>>, vector<16x14xf32>,
    return
  }
  func.func @transform_0(%arg0: i32) -> (i32, i32) {
    %c0_i32 = arith.constant 0 : i32
    %c0_i32_0 = arith.constant 0 : i32
    %c0_i32_1 = arith.constant 0 : i32
    return %c0_i32, %c0_i32_0 : i32, i32
  }
  func.func @transform_1(%arg0: i32) -> (i32, i32) {
    %c0_i32 = arith.constant 0 : i32
    %c0_i32_0 = arith.constant 0 : i32
    %c0_i32_1 = arith.constant 0 : i32
    return %c0_i32, %c0_i32_0 : i32, i32
  }
  func.func @transform_2(%arg0: i32) -> (i32, i32) {
    %c0_i32 = arith.constant 0 : i32
    %c0_i32_0 = arith.constant 0 : i32
    %c0_i32_1 = arith.constant 0 : i32
    return %c0_i32, %c0_i32_0 : i32, i32
  }
  func.func @transform_3(%arg0: i32) -> (i32, i32) {
    %c0_i32 = arith.constant 0 : i32
    %c0_i32_0 = arith.constant 0 : i32
    %c0_i32_1 = arith.constant 0 : i32
    return %c0_i32, %c0_i32_0 : i32, i32
  }
}

module attributes {stable_mosaic.version = 11 : i64} {
  func.func @_recurrence_kernel(%arg0: i32, %arg1: memref<8x2x14xf32, #tpu.memory_space<vmem>>, %arg2: memref<2x14xf32, #tpu.memory_space<vmem>>, %arg3: memref<14x14xf32, #tpu.memory_space<vmem>>, %arg4: memref<8x2x14xf32, #tpu.memory_space<vmem>>, %arg5: memref<2x14xf32, #tpu.memory_space<vmem>>, %arg6: memref<2x14xf32, #tpu.memory_space<vmem>>) attributes {dimension_semantics = [#tpu.dimension_semantics<arbitrary>], iteration_bounds = array<i64: 1>, scalar_prefetch = 0 : i64, scratch_operands = 1 : i64, tpu.core_type = #tpu.core_type<tc>, window_params = [{transform_indices = @transform_0, window_bounds = array<i64: 8, 2, 14>}, {pipeline_mode = #tpu.pipeline_mode<synchronous>, transform_indices = @transform_1, window_bounds = array<i64: 2, 14>}, {pipeline_mode = #tpu.pipeline_mode<synchronous>, transform_indices = @transform_2, window_bounds = array<i64: 14, 14>}, {transform_indices = @transform_3, window_bounds = array<i64: 8, 2, 14>}, {pipeline_mode = #tpu.pipeline_mode<synchronous>, transform_indices = @transform_4, window_bounds = array<i64: 2, 14>}]} {
    %c0_i32 = arith.constant 0 : i32
    %0 = arith.cmpi eq, %arg0, %c0_i32 : i32
    %1 = arith.extui %0 : i1 to i32
    %c0_i32_0 = arith.constant 0 : i32
    %2 = arith.cmpi ne, %1, %c0_i32_0 : i32
    scf.if %2 {
      %c0_98 = arith.constant 0 : index
      %c0_99 = arith.constant 0 : index
      %142 = vector.load %arg2[%c0_98, %c0_99] : memref<2x14xf32, #tpu.memory_space<vmem>>, vector<2x14xf32>
      %c0_100 = arith.constant 0 : index
      %c0_101 = arith.constant 0 : index
      %143 = vector.load %arg6[%c0_100, %c0_101] : memref<2x14xf32, #tpu.memory_space<vmem>>, vector<2x14xf32>
      tpu.vector_store %arg6[%c0_100, %c0_101], %142 {strides = array<i32>} : memref<2x14xf32, #tpu.memory_space<vmem>>, vector<2x14xf32>,
    } else {
    }
    %c0_i32_1 = arith.constant 0 : i32
    %c0 = arith.constant 0 : index
    %c0_2 = arith.constant 0 : index
    %3 = vector.load %arg6[%c0, %c0_2] : memref<2x14xf32, #tpu.memory_space<vmem>>, vector<2x14xf32>
    %4 = arith.index_cast %c0_i32_1 : i32 to index
    %c0_3 = arith.constant 0 : index
    %c0_4 = arith.constant 0 : index
    %5 = vector.load %arg4[%4, %c0_3, %c0_4] : memref<8x2x14xf32, #tpu.memory_space<vmem>>, vector<1x2x14xf32>
    %6 = vector.shape_cast %5 : vector<1x2x14xf32> to vector<2x14xf32>
    %7 = vector.shape_cast %3 : vector<2x14xf32> to vector<1x2x14xf32>
    tpu.vector_store %arg4[%4, %c0_3, %c0_4], %7 {strides = array<i32>} : memref<8x2x14xf32, #tpu.memory_space<vmem>>, vector<1x2x14xf32>,
    %8 = arith.index_cast %c0_i32_1 : i32 to index
    %c0_5 = arith.constant 0 : index
    %c0_6 = arith.constant 0 : index
    %9 = vector.load %arg1[%8, %c0_5, %c0_6] : memref<8x2x14xf32, #tpu.memory_space<vmem>>, vector<1x2x14xf32>
    %10 = vector.shape_cast %9 : vector<1x2x14xf32> to vector<2x14xf32>
    %c0_7 = arith.constant 0 : index
    %c0_8 = arith.constant 0 : index
    %11 = vector.load %arg3[%c0_7, %c0_8] : memref<14x14xf32, #tpu.memory_space<vmem>>, vector<14x14xf32>
    %cst = arith.constant dense<0.000000e+00> : vector<2x14xf32>
    %12 = tpu.matmul %3, %11, %cst {dimension_numbers = #tpu.dot_dimension_numbers<[1], [0], [0], [1], [0, 0, 1, 1], [], []>} : vector<2x14xf32>, vector<14x14xf32>, vector<2x14xf32> -> vector<2x14xf32>
    %13 = arith.addf %10, %12 : vector<2x14xf32>
    %14 = arith.negf %13 : vector<2x14xf32>
    %15 = math.exp %14 : vector<2x14xf32>
    %cst_9 = arith.constant 1.000000e+00 : f32
    %16 = vector.broadcast %cst_9 : f32 to vector<2x14xf32>
    %17 = arith.addf %16, %15 : vector<2x14xf32>
    %18 = arith.divf %16, %17 : vector<2x14xf32>
    %c0_10 = arith.constant 0 : index
    %c0_11 = arith.constant 0 : index
    %19 = vector.load %arg6[%c0_10, %c0_11] : memref<2x14xf32, #tpu.memory_space<vmem>>, vector<2x14xf32>
    tpu.vector_store %arg6[%c0_10, %c0_11], %18 {strides = array<i32>} : memref<2x14xf32, #tpu.memory_space<vmem>>, vector<2x14xf32>,
    %c1_i32 = arith.constant 1 : i32
    %c0_12 = arith.constant 0 : index
    %c0_13 = arith.constant 0 : index
    %20 = vector.load %arg6[%c0_12, %c0_13] : memref<2x14xf32, #tpu.memory_space<vmem>>, vector<2x14xf32>
    %21 = arith.index_cast %c1_i32 : i32 to index
    %c0_14 = arith.constant 0 : index
    %c0_15 = arith.constant 0 : index
    %22 = vector.load %arg4[%21, %c0_14, %c0_15] : memref<8x2x14xf32, #tpu.memory_space<vmem>>, vector<1x2x14xf32>
    %23 = vector.shape_cast %22 : vector<1x2x14xf32> to vector<2x14xf32>
    %24 = vector.shape_cast %20 : vector<2x14xf32> to vector<1x2x14xf32>
    tpu.vector_store %arg4[%21, %c0_14, %c0_15], %24 {strides = array<i32>} : memref<8x2x14xf32, #tpu.memory_space<vmem>>, vector<1x2x14xf32>,
    %25 = arith.index_cast %c1_i32 : i32 to index
    %c0_16 = arith.constant 0 : index
    %c0_17 = arith.constant 0 : index
    %26 = vector.load %arg1[%25, %c0_16, %c0_17] : memref<8x2x14xf32, #tpu.memory_space<vmem>>, vector<1x2x14xf32>
    %27 = vector.shape_cast %26 : vector<1x2x14xf32> to vector<2x14xf32>
    %c0_18 = arith.constant 0 : index
    %c0_19 = arith.constant 0 : index
    %28 = vector.load %arg3[%c0_18, %c0_19] : memref<14x14xf32, #tpu.memory_space<vmem>>, vector<14x14xf32>
    %cst_20 = arith.constant dense<0.000000e+00> : vector<2x14xf32>
    %29 = tpu.matmul %20, %28, %cst_20 {dimension_numbers = #tpu.dot_dimension_numbers<[1], [0], [0], [1], [0, 0, 1, 1], [], []>} : vector<2x14xf32>, vector<14x14xf32>, vector<2x14xf32> -> vector<2x14xf32>
    %30 = arith.addf %27, %29 : vector<2x14xf32>
    %31 = arith.negf %30 : vector<2x14xf32>
    %32 = math.exp %31 : vector<2x14xf32>
    %cst_21 = arith.constant 1.000000e+00 : f32
    %33 = vector.broadcast %cst_21 : f32 to vector<2x14xf32>
    %34 = arith.addf %33, %32 : vector<2x14xf32>
    %35 = arith.divf %33, %34 : vector<2x14xf32>
    %c0_22 = arith.constant 0 : index
    %c0_23 = arith.constant 0 : index
    %36 = vector.load %arg6[%c0_22, %c0_23] : memref<2x14xf32, #tpu.memory_space<vmem>>, vector<2x14xf32>
    tpu.vector_store %arg6[%c0_22, %c0_23], %35 {strides = array<i32>} : memref<2x14xf32, #tpu.memory_space<vmem>>, vector<2x14xf32>,
    %c2_i32 = arith.constant 2 : i32
    %c0_24 = arith.constant 0 : index
    %c0_25 = arith.constant 0 : index
    %37 = vector.load %arg6[%c0_24, %c0_25] : memref<2x14xf32, #tpu.memory_space<vmem>>, vector<2x14xf32>
    %38 = arith.index_cast %c2_i32 : i32 to index
    %c0_26 = arith.constant 0 : index
    %c0_27 = arith.constant 0 : index
    %39 = vector.load %arg4[%38, %c0_26, %c0_27] : memref<8x2x14xf32, #tpu.memory_space<vmem>>, vector<1x2x14xf32>
    %40 = vector.shape_cast %39 : vector<1x2x14xf32> to vector<2x14xf32>
    %41 = vector.shape_cast %37 : vector<2x14xf32> to vector<1x2x14xf32>
    tpu.vector_store %arg4[%38, %c0_26, %c0_27], %41 {strides = array<i32>} : memref<8x2x14xf32, #tpu.memory_space<vmem>>, vector<1x2x14xf32>,
    %42 = arith.index_cast %c2_i32 : i32 to index
    %c0_28 = arith.constant 0 : index
    %c0_29 = arith.constant 0 : index
    %43 = vector.load %arg1[%42, %c0_28, %c0_29] : memref<8x2x14xf32, #tpu.memory_space<vmem>>, vector<1x2x14xf32>
    %44 = vector.shape_cast %43 : vector<1x2x14xf32> to vector<2x14xf32>
    %c0_30 = arith.constant 0 : index
    %c0_31 = arith.constant 0 : index
    %45 = vector.load %arg3[%c0_30, %c0_31] : memref<14x14xf32, #tpu.memory_space<vmem>>, vector<14x14xf32>
    %cst_32 = arith.constant dense<0.000000e+00> : vector<2x14xf32>
    %46 = tpu.matmul %37, %45, %cst_32 {dimension_numbers = #tpu.dot_dimension_numbers<[1], [0], [0], [1], [0, 0, 1, 1], [], []>} : vector<2x14xf32>, vector<14x14xf32>, vector<2x14xf32> -> vector<2x14xf32>
    %47 = arith.addf %44, %46 : vector<2x14xf32>
    %48 = arith.negf %47 : vector<2x14xf32>
    %49 = math.exp %48 : vector<2x14xf32>
    %cst_33 = arith.constant 1.000000e+00 : f32
    %50 = vector.broadcast %cst_33 : f32 to vector<2x14xf32>
    %51 = arith.addf %50, %49 : vector<2x14xf32>
    %52 = arith.divf %50, %51 : vector<2x14xf32>
    %c0_34 = arith.constant 0 : index
    %c0_35 = arith.constant 0 : index
    %53 = vector.load %arg6[%c0_34, %c0_35] : memref<2x14xf32, #tpu.memory_space<vmem>>, vector<2x14xf32>
    tpu.vector_store %arg6[%c0_34, %c0_35], %52 {strides = array<i32>} : memref<2x14xf32, #tpu.memory_space<vmem>>, vector<2x14xf32>,
    %c3_i32 = arith.constant 3 : i32
    %c0_36 = arith.constant 0 : index
    %c0_37 = arith.constant 0 : index
    %54 = vector.load %arg6[%c0_36, %c0_37] : memref<2x14xf32, #tpu.memory_space<vmem>>, vector<2x14xf32>
    %55 = arith.index_cast %c3_i32 : i32 to index
    %c0_38 = arith.constant 0 : index
    %c0_39 = arith.constant 0 : index
    %56 = vector.load %arg4[%55, %c0_38, %c0_39] : memref<8x2x14xf32, #tpu.memory_space<vmem>>, vector<1x2x14xf32>
    %57 = vector.shape_cast %56 : vector<1x2x14xf32> to vector<2x14xf32>
    %58 = vector.shape_cast %54 : vector<2x14xf32> to vector<1x2x14xf32>
    tpu.vector_store %arg4[%55, %c0_38, %c0_39], %58 {strides = array<i32>} : memref<8x2x14xf32, #tpu.memory_space<vmem>>, vector<1x2x14xf32>,
    %59 = arith.index_cast %c3_i32 : i32 to index
    %c0_40 = arith.constant 0 : index
    %c0_41 = arith.constant 0 : index
    %60 = vector.load %arg1[%59, %c0_40, %c0_41] : memref<8x2x14xf32, #tpu.memory_space<vmem>>, vector<1x2x14xf32>
    %61 = vector.shape_cast %60 : vector<1x2x14xf32> to vector<2x14xf32>
    %c0_42 = arith.constant 0 : index
    %c0_43 = arith.constant 0 : index
    %62 = vector.load %arg3[%c0_42, %c0_43] : memref<14x14xf32, #tpu.memory_space<vmem>>, vector<14x14xf32>
    %cst_44 = arith.constant dense<0.000000e+00> : vector<2x14xf32>
    %63 = tpu.matmul %54, %62, %cst_44 {dimension_numbers = #tpu.dot_dimension_numbers<[1], [0], [0], [1], [0, 0, 1, 1], [], []>} : vector<2x14xf32>, vector<14x14xf32>, vector<2x14xf32> -> vector<2x14xf32>
    %64 = arith.addf %61, %63 : vector<2x14xf32>
    %65 = arith.negf %64 : vector<2x14xf32>
    %66 = math.exp %65 : vector<2x14xf32>
    %cst_45 = arith.constant 1.000000e+00 : f32
    %67 = vector.broadcast %cst_45 : f32 to vector<2x14xf32>
    %68 = arith.addf %67, %66 : vector<2x14xf32>
    %69 = arith.divf %67, %68 : vector<2x14xf32>
    %c0_46 = arith.constant 0 : index
    %c0_47 = arith.constant 0 : index
    %70 = vector.load %arg6[%c0_46, %c0_47] : memref<2x14xf32, #tpu.memory_space<vmem>>, vector<2x14xf32>
    tpu.vector_store %arg6[%c0_46, %c0_47], %69 {strides = array<i32>} : memref<2x14xf32, #tpu.memory_space<vmem>>, vector<2x14xf32>,
    %c4_i32 = arith.constant 4 : i32
    %c0_48 = arith.constant 0 : index
    %c0_49 = arith.constant 0 : index
    %71 = vector.load %arg6[%c0_48, %c0_49] : memref<2x14xf32, #tpu.memory_space<vmem>>, vector<2x14xf32>
    %72 = arith.index_cast %c4_i32 : i32 to index
    %c0_50 = arith.constant 0 : index
    %c0_51 = arith.constant 0 : index
    %73 = vector.load %arg4[%72, %c0_50, %c0_51] : memref<8x2x14xf32, #tpu.memory_space<vmem>>, vector<1x2x14xf32>
    %74 = vector.shape_cast %73 : vector<1x2x14xf32> to vector<2x14xf32>
    %75 = vector.shape_cast %71 : vector<2x14xf32> to vector<1x2x14xf32>
    tpu.vector_store %arg4[%72, %c0_50, %c0_51], %75 {strides = array<i32>} : memref<8x2x14xf32, #tpu.memory_space<vmem>>, vector<1x2x14xf32>,
    %76 = arith.index_cast %c4_i32 : i32 to index
    %c0_52 = arith.constant 0 : index
    %c0_53 = arith.constant 0 : index
    %77 = vector.load %arg1[%76, %c0_52, %c0_53] : memref<8x2x14xf32, #tpu.memory_space<vmem>>, vector<1x2x14xf32>
    %78 = vector.shape_cast %77 : vector<1x2x14xf32> to vector<2x14xf32>
    %c0_54 = arith.constant 0 : index
    %c0_55 = arith.constant 0 : index
    %79 = vector.load %arg3[%c0_54, %c0_55] : memref<14x14xf32, #tpu.memory_space<vmem>>, vector<14x14xf32>
    %cst_56 = arith.constant dense<0.000000e+00> : vector<2x14xf32>
    %80 = tpu.matmul %71, %79, %cst_56 {dimension_numbers = #tpu.dot_dimension_numbers<[1], [0], [0], [1], [0, 0, 1, 1], [], []>} : vector<2x14xf32>, vector<14x14xf32>, vector<2x14xf32> -> vector<2x14xf32>
    %81 = arith.addf %78, %80 : vector<2x14xf32>
    %82 = arith.negf %81 : vector<2x14xf32>
    %83 = math.exp %82 : vector<2x14xf32>
    %cst_57 = arith.constant 1.000000e+00 : f32
    %84 = vector.broadcast %cst_57 : f32 to vector<2x14xf32>
    %85 = arith.addf %84, %83 : vector<2x14xf32>
    %86 = arith.divf %84, %85 : vector<2x14xf32>
    %c0_58 = arith.constant 0 : index
    %c0_59 = arith.constant 0 : index
    %87 = vector.load %arg6[%c0_58, %c0_59] : memref<2x14xf32, #tpu.memory_space<vmem>>, vector<2x14xf32>
    tpu.vector_store %arg6[%c0_58, %c0_59], %86 {strides = array<i32>} : memref<2x14xf32, #tpu.memory_space<vmem>>, vector<2x14xf32>,
    %c5_i32 = arith.constant 5 : i32
    %c0_60 = arith.constant 0 : index
    %c0_61 = arith.constant 0 : index
    %88 = vector.load %arg6[%c0_60, %c0_61] : memref<2x14xf32, #tpu.memory_space<vmem>>, vector<2x14xf32>
    %89 = arith.index_cast %c5_i32 : i32 to index
    %c0_62 = arith.constant 0 : index
    %c0_63 = arith.constant 0 : index
    %90 = vector.load %arg4[%89, %c0_62, %c0_63] : memref<8x2x14xf32, #tpu.memory_space<vmem>>, vector<1x2x14xf32>
    %91 = vector.shape_cast %90 : vector<1x2x14xf32> to vector<2x14xf32>
    %92 = vector.shape_cast %88 : vector<2x14xf32> to vector<1x2x14xf32>
    tpu.vector_store %arg4[%89, %c0_62, %c0_63], %92 {strides = array<i32>} : memref<8x2x14xf32, #tpu.memory_space<vmem>>, vector<1x2x14xf32>,
    %93 = arith.index_cast %c5_i32 : i32 to index
    %c0_64 = arith.constant 0 : index
    %c0_65 = arith.constant 0 : index
    %94 = vector.load %arg1[%93, %c0_64, %c0_65] : memref<8x2x14xf32, #tpu.memory_space<vmem>>, vector<1x2x14xf32>
    %95 = vector.shape_cast %94 : vector<1x2x14xf32> to vector<2x14xf32>
    %c0_66 = arith.constant 0 : index
    %c0_67 = arith.constant 0 : index
    %96 = vector.load %arg3[%c0_66, %c0_67] : memref<14x14xf32, #tpu.memory_space<vmem>>, vector<14x14xf32>
    %cst_68 = arith.constant dense<0.000000e+00> : vector<2x14xf32>
    %97 = tpu.matmul %88, %96, %cst_68 {dimension_numbers = #tpu.dot_dimension_numbers<[1], [0], [0], [1], [0, 0, 1, 1], [], []>} : vector<2x14xf32>, vector<14x14xf32>, vector<2x14xf32> -> vector<2x14xf32>
    %98 = arith.addf %95, %97 : vector<2x14xf32>
    %99 = arith.negf %98 : vector<2x14xf32>
    %100 = math.exp %99 : vector<2x14xf32>
    %cst_69 = arith.constant 1.000000e+00 : f32
    %101 = vector.broadcast %cst_69 : f32 to vector<2x14xf32>
    %102 = arith.addf %101, %100 : vector<2x14xf32>
    %103 = arith.divf %101, %102 : vector<2x14xf32>
    %c0_70 = arith.constant 0 : index
    %c0_71 = arith.constant 0 : index
    %104 = vector.load %arg6[%c0_70, %c0_71] : memref<2x14xf32, #tpu.memory_space<vmem>>, vector<2x14xf32>
    tpu.vector_store %arg6[%c0_70, %c0_71], %103 {strides = array<i32>} : memref<2x14xf32, #tpu.memory_space<vmem>>, vector<2x14xf32>,
    %c6_i32 = arith.constant 6 : i32
    %c0_72 = arith.constant 0 : index
    %c0_73 = arith.constant 0 : index
    %105 = vector.load %arg6[%c0_72, %c0_73] : memref<2x14xf32, #tpu.memory_space<vmem>>, vector<2x14xf32>
    %106 = arith.index_cast %c6_i32 : i32 to index
    %c0_74 = arith.constant 0 : index
    %c0_75 = arith.constant 0 : index
    %107 = vector.load %arg4[%106, %c0_74, %c0_75] : memref<8x2x14xf32, #tpu.memory_space<vmem>>, vector<1x2x14xf32>
    %108 = vector.shape_cast %107 : vector<1x2x14xf32> to vector<2x14xf32>
    %109 = vector.shape_cast %105 : vector<2x14xf32> to vector<1x2x14xf32>
    tpu.vector_store %arg4[%106, %c0_74, %c0_75], %109 {strides = array<i32>} : memref<8x2x14xf32, #tpu.memory_space<vmem>>, vector<1x2x14xf32>,
    %110 = arith.index_cast %c6_i32 : i32 to index
    %c0_76 = arith.constant 0 : index
    %c0_77 = arith.constant 0 : index
    %111 = vector.load %arg1[%110, %c0_76, %c0_77] : memref<8x2x14xf32, #tpu.memory_space<vmem>>, vector<1x2x14xf32>
    %112 = vector.shape_cast %111 : vector<1x2x14xf32> to vector<2x14xf32>
    %c0_78 = arith.constant 0 : index
    %c0_79 = arith.constant 0 : index
    %113 = vector.load %arg3[%c0_78, %c0_79] : memref<14x14xf32, #tpu.memory_space<vmem>>, vector<14x14xf32>
    %cst_80 = arith.constant dense<0.000000e+00> : vector<2x14xf32>
    %114 = tpu.matmul %105, %113, %cst_80 {dimension_numbers = #tpu.dot_dimension_numbers<[1], [0], [0], [1], [0, 0, 1, 1], [], []>} : vector<2x14xf32>, vector<14x14xf32>, vector<2x14xf32> -> vector<2x14xf32>
    %115 = arith.addf %112, %114 : vector<2x14xf32>
    %116 = arith.negf %115 : vector<2x14xf32>
    %117 = math.exp %116 : vector<2x14xf32>
    %cst_81 = arith.constant 1.000000e+00 : f32
    %118 = vector.broadcast %cst_81 : f32 to vector<2x14xf32>
    %119 = arith.addf %118, %117 : vector<2x14xf32>
    %120 = arith.divf %118, %119 : vector<2x14xf32>
    %c0_82 = arith.constant 0 : index
    %c0_83 = arith.constant 0 : index
    %121 = vector.load %arg6[%c0_82, %c0_83] : memref<2x14xf32, #tpu.memory_space<vmem>>, vector<2x14xf32>
    tpu.vector_store %arg6[%c0_82, %c0_83], %120 {strides = array<i32>} : memref<2x14xf32, #tpu.memory_space<vmem>>, vector<2x14xf32>,
    %c7_i32 = arith.constant 7 : i32
    %c0_84 = arith.constant 0 : index
    %c0_85 = arith.constant 0 : index
    %122 = vector.load %arg6[%c0_84, %c0_85] : memref<2x14xf32, #tpu.memory_space<vmem>>, vector<2x14xf32>
    %123 = arith.index_cast %c7_i32 : i32 to index
    %c0_86 = arith.constant 0 : index
    %c0_87 = arith.constant 0 : index
    %124 = vector.load %arg4[%123, %c0_86, %c0_87] : memref<8x2x14xf32, #tpu.memory_space<vmem>>, vector<1x2x14xf32>
    %125 = vector.shape_cast %124 : vector<1x2x14xf32> to vector<2x14xf32>
    %126 = vector.shape_cast %122 : vector<2x14xf32> to vector<1x2x14xf32>
    tpu.vector_store %arg4[%123, %c0_86, %c0_87], %126 {strides = array<i32>} : memref<8x2x14xf32, #tpu.memory_space<vmem>>, vector<1x2x14xf32>,
    %127 = arith.index_cast %c7_i32 : i32 to index
    %c0_88 = arith.constant 0 : index
    %c0_89 = arith.constant 0 : index
    %128 = vector.load %arg1[%127, %c0_88, %c0_89] : memref<8x2x14xf32, #tpu.memory_space<vmem>>, vector<1x2x14xf32>
    %129 = vector.shape_cast %128 : vector<1x2x14xf32> to vector<2x14xf32>
    %c0_90 = arith.constant 0 : index
    %c0_91 = arith.constant 0 : index
    %130 = vector.load %arg3[%c0_90, %c0_91] : memref<14x14xf32, #tpu.memory_space<vmem>>, vector<14x14xf32>
    %cst_92 = arith.constant dense<0.000000e+00> : vector<2x14xf32>
    %131 = tpu.matmul %122, %130, %cst_92 {dimension_numbers = #tpu.dot_dimension_numbers<[1], [0], [0], [1], [0, 0, 1, 1], [], []>} : vector<2x14xf32>, vector<14x14xf32>, vector<2x14xf32> -> vector<2x14xf32>
    %132 = arith.addf %129, %131 : vector<2x14xf32>
    %133 = arith.negf %132 : vector<2x14xf32>
    %134 = math.exp %133 : vector<2x14xf32>
    %cst_93 = arith.constant 1.000000e+00 : f32
    %135 = vector.broadcast %cst_93 : f32 to vector<2x14xf32>
    %136 = arith.addf %135, %134 : vector<2x14xf32>
    %137 = arith.divf %135, %136 : vector<2x14xf32>
    %c0_94 = arith.constant 0 : index
    %c0_95 = arith.constant 0 : index
    %138 = vector.load %arg6[%c0_94, %c0_95] : memref<2x14xf32, #tpu.memory_space<vmem>>, vector<2x14xf32>
    tpu.vector_store %arg6[%c0_94, %c0_95], %137 {strides = array<i32>} : memref<2x14xf32, #tpu.memory_space<vmem>>, vector<2x14xf32>,
    %c8_i32 = arith.constant 8 : i32
    %c0_i32_96 = arith.constant 0 : i32
    %139 = arith.cmpi eq, %arg0, %c0_i32_96 : i32
    %140 = arith.extui %139 : i1 to i32
    %c0_i32_97 = arith.constant 0 : i32
    %141 = arith.cmpi ne, %140, %c0_i32_97 : i32
    scf.if %141 {
      %c0_98 = arith.constant 0 : index
      %c0_99 = arith.constant 0 : index
      %142 = vector.load %arg6[%c0_98, %c0_99] : memref<2x14xf32, #tpu.memory_space<vmem>>, vector<2x14xf32>
      %c0_100 = arith.constant 0 : index
      %c0_101 = arith.constant 0 : index
      %143 = vector.load %arg5[%c0_100, %c0_101] : memref<2x14xf32, #tpu.memory_space<vmem>>, vector<2x14xf32>
      tpu.vector_store %arg5[%c0_100, %c0_101], %142 {strides = array<i32>} : memref<2x14xf32, #tpu.memory_space<vmem>>, vector<2x14xf32>,
    } else {
    }
    return
  }
  func.func @transform_0(%arg0: i32) -> (i32, i32, i32) {
    %c0_i32 = arith.constant 0 : i32
    %c0_i32_0 = arith.constant 0 : i32
    %c0_i32_1 = arith.constant 0 : i32
    return %arg0, %c0_i32, %c0_i32_0 : i32, i32, i32
  }
  func.func @transform_1(%arg0: i32) -> (i32, i32) {
    %c0_i32 = arith.constant 0 : i32
    %c0_i32_0 = arith.constant 0 : i32
    %c0_i32_1 = arith.constant 0 : i32
    return %c0_i32, %c0_i32_0 : i32, i32
  }
  func.func @transform_2(%arg0: i32) -> (i32, i32) {
    %c0_i32 = arith.constant 0 : i32
    %c0_i32_0 = arith.constant 0 : i32
    %c0_i32_1 = arith.constant 0 : i32
    return %c0_i32, %c0_i32_0 : i32, i32
  }
  func.func @transform_3(%arg0: i32) -> (i32, i32, i32) {
    %c0_i32 = arith.constant 0 : i32
    %c0_i32_0 = arith.constant 0 : i32
    %c0_i32_1 = arith.constant 0 : i32
    return %arg0, %c0_i32, %c0_i32_0 : i32, i32, i32
  }
  func.func @transform_4(%arg0: i32) -> (i32, i32) {
    %c0_i32 = arith.constant 0 : i32
    %c0_i32_0 = arith.constant 0 : i32
    %c0_i32_1 = arith.constant 0 : i32
    return %c0_i32, %c0_i32_0 : i32, i32
  }
}

</mosaic_0001>

<bundles_post_ra>
// kernel: rnn_forward_sequence.5
= control target key start
LH: loop header
LB: loop body
LE: loop exit
PB: predicated region body
PF: predicated region fallthrough
CT: control target
= control target key end

     0   :  { %10 = vsyncpa [#allocation3], 0  ;;  %s330_s0 = inlined_call_operand.hbm [shape: f32[16,32], index: 0, kind: input, shape index: {}]   ;;  %s331_s1 = inlined_call_operand.vmem [shape: f32[16,14], index: 1, kind: input, shape index: {}]   ;;  %s332_s2 = inlined_call_operand.vmem [shape: f32[32,32], index: 2, kind: input, shape index: {}]   ;;  %s333_s3 = inlined_call_operand.hbm [shape: f32[14,32], index: 3, kind: input, shape index: {}]   ;;  %s334_s4 = inlined_call_operand.vmem [shape: f32[1,32], index: 4, kind: input, shape index: {}]   ;;  %s335_s5 = inlined_call_operand.hbm [shape: f32[16,32], index: 5, kind: output, shape index: {}]  }
   0x1   :  { %11 = vsyncpa [#allocation6], 0 }
   0x2   :  { %12 = vsyncpa [#allocation4], 0  ;;  %s17_s20 = sshll.u32 %s330_s0, 4  ;;  %s250_s21 = smov [#allocation2]   ;;  %s18_s20 = int_to_ptr.hbm [resolvable:$true] %s17_s20 }
   0x3   :  { %s19_s22 = sshll.u32 %s250_s21, 4  ;;  %s34_s25 = sshll.u32 %s333_s3, 4  ;;  %s20_s22 = int_to_ptr.vmem [resolvable:$true] %s19_s22  ;;  %s35_s25 = int_to_ptr.hbm [resolvable:$true] %s34_s25 }
   0x4   :  { %s251_s26 = smov 128   ;;  %s252_s27 = smov 8  }
   0x5   :  { %25 = dma.hbm_to_vmem [thread:$0]  %s18_s20, 256, %s20_s22, [#allocation3], %s251_s26, %s251_s26, %s252_s27  }
   0x6   :  { %s253_s28 = smov [#allocation5]  }
   0x7   :  { %s36_s29 = sshll.u32 %s253_s28, 4  ;;  %s37_s29 = int_to_ptr.vmem [resolvable:$true] %s36_s29 }
   0x8   :  { %42 = dma.hbm_to_vmem [thread:$0]  %s35_s25, 256, %s37_s29, [#allocation6], %s251_s26, %s251_s26, %s252_s27  }
   0x9   :  { %244 = dma.done.wait [#allocation3], 256  }
   0xa   :  { %245 = vsyncadd [#allocation3], 4294967040 }
   0xb   :  { %246 = dma.done.wait [#allocation6], 256  }
   0xc   :  { %247 = vsyncadd [#allocation6], 4294967040  ;;  %vm70_vm0 = vcmask 1045504   ;;  %v58_v0 = vld [vmem:[%s332_s2 + $0x18] sm:$0xff]  ;;  %v57_v1 = vld [vmem:[%s332_s2 + $0x10] sm:$0xff]  ;;  %vm63_vm1 = vcmask 113664  }
   0xd   :  { %v62_v2 = vld [vmem:[#allocation5 + $0x8] sm:$0x3f]  ;;  %162 = vmatpush.msra.mxu2 %v58_v0  ;;  %v61_v3 = vld [vmem:[#allocation5] sm:$0xff]  ;;  %v56_v4 = vld [vmem:[%s332_s2 + $0x8] sm:$0xff]  ;;  %116 = vmatpush.msra.mxu1 %v58_v0  ;;  %vm97_vm2 = vcmask 261120   ;;  %s254_s15 = smov [#allocation7]  }
   0xe   :  { %160 = vmatpush.msk.msra.mxu3 %vm70_vm0, %v62_v2  ;;  %v60_v5 = vld [vmem:[%s331_s1 + $0x8] sm:$0xff]  ;;  %155 = vmatpush.msk.msra.mxu0 %vm70_vm0, %v62_v2  ;;  %v59_v6 = vld [vmem:[%s331_s1] sm:$0xff]  ;;  %s139_s16 = sshll.u32 %s254_s15, 4  ;;  %s141_s19 = sshll.u32 %s335_s5, 4  ;;  %s140_s16 = int_to_ptr.vmem [resolvable:$true] %s139_s16  ;;  %s142_s19 = int_to_ptr.hbm [resolvable:$true] %s141_s19 }
   0xf   :  { %163 = vmatpush.msra.mxu2 %v57_v1  ;;  %v55_v7 = vld [vmem:[%s332_s2] sm:$0xff]  ;;  %117 = vmatpush.msra.mxu1 %v57_v1  ;;  %v54_v8 = vld [vmem:[#allocation2 + $0x8] sm:$0xff] }
  0x10   :  { %161 = vmatpush.msra.mxu3 %v61_v3  ;;  %89 = vmatpush.msra.mxu0 %v61_v3  ;;  %v53_v9 = vld [vmem:[#allocation2] sm:$0xff] }
  0x11   :  { %157 = vmatmul.msk.f32.vlgmr.msra.gmra.mxu3 %vm63_vm1, %v60_v5  ;;  %164 = vmatpush.msra.mxu2 %v56_v4  ;;  %v171_v11 = vld [vmem:[%s334_s4] ss:$0 sm:$0xff] }
  0x12   :  { %118 = vmatpush.msra.mxu1 %v56_v4  ;;  %156 = vmatmul.msk.f32.vlgmr.msra.gmra.mxu0 %vm63_vm1, %v59_v6 }
  0x13   :  { %165 = vmatpush.msra.mxu2 %v55_v7 }
  0x14   :  { %159 = vmatmul.msk.f32.vlgmr.msra.gmra.mxu2 %vm97_vm2, %v54_v8  ;;  %119 = vmatpush.msra.mxu1 %v55_v7 }
  0x15   :  { %158 = vmatmul.msk.f32.vlgmr.msra.gmra.mxu1 %vm97_vm2, %v53_v9 }
  0x8f   :  { %v91_v10 = vpop.f32.mrf.mxu0 }
  0x92   :  { %v121_v12 = vpop.f32.mrf.mxu1 }
  0x93   :  { %v122_v13 = vadd.f32 %v121_v12, %v91_v10 }
  0x94   :  { %v94_v14 = vpop.f32.mrf.mxu3 }
  0x95   :  { %v131_v15 = vadd.f32 %v171_v11, %v122_v13 }
  0x97   :  { %133 = vst.msk [vmem:[#allocation7] sm:$0xff] %vm97_vm2, %v131_v15  ;;  %v124_v16 = vpop.f32.mrf.mxu2 }
  0x98   :  { %v125_v17 = vadd.f32 %v124_v16, %v94_v14 }
  0x9a   :  { %v132_v18 = vadd.f32 %v171_v11, %v125_v17 }
  0x9c   :  { %134 = vst.msk [vmem:[#allocation7 + $0x8] sm:$0xff] %vm97_vm2, %v132_v18 }
  0x9d   :  { %147 = dma.vmem_to_hbm [thread:$0]  %s140_s16, 256, %s142_s19, [#allocation4], %s251_s26, %s251_s26, %s252_s27  }
  0x9e   :  { %248 = dma.done.wait [#allocation4], 256  }
  0x9f   :  { %249 = vsyncadd [#allocation4], 4294967040 }
  0xa0   :  { %152 = vsyncpa [#allocation3], 1 }
  0xa1   :  { %153 = vsyncpa [#allocation6], 1 }
  0xa2   :  { %154 = vsyncpa [#allocation4], 1 }

// kernel: rnn_forward_sequence.3
= control target key start
LH: loop header
LB: loop body
LE: loop exit
PB: predicated region body
PF: predicated region fallthrough
CT: control target
= control target key end

     0   :  { %8 = vsyncpa [#allocation3], 0  ;;  %s114_s15 = smov [#allocation2]   ;;  %s115_s17 = smov 128   ;;  %s161_s0 = inlined_call_operand.hbm [shape: f32[16,32], index: 0, kind: input, shape index: {}]   ;;  %s162_s1 = inlined_call_operand.vmem [shape: f32[32,14], index: 1, kind: input, shape index: {}]   ;;  %s163_s2 = inlined_call_operand.vmem [shape: f32[1,14], index: 2, kind: input, shape index: {}]   ;;  %s164_s3 = inlined_call_operand.vmem [shape: f32[16,14], index: 3, kind: output, shape index: {}]  }
   0x1   :  { %s13_s14 = sshll.u32 %s161_s0, 4  ;;  %s15_s16 = sshll.u32 %s114_s15, 4  ;;  %s14_s14 = int_to_ptr.hbm [resolvable:$true] %s13_s14  ;;  %s16_s16 = int_to_ptr.vmem [resolvable:$true] %s15_s16 }
   0x2   :  { %s116_s18 = smov 8  }
   0x3   :  { %21 = dma.hbm_to_vmem [thread:$0]  %s14_s14, 256, %s16_s16, [#allocation3], %s115_s17, %s115_s17, %s116_s18  }
   0x4   :  { %112 = dma.done.wait [#allocation3], 256  }
   0x5   :  { %113 = vsyncadd [#allocation3], 4294967040  ;;  %v35_v0 = vld [vmem:[%s162_s1 + $0x18] sm:$0xff]  ;;  %v34_v1 = vld [vmem:[%s162_s1 + $0x10] sm:$0xff]  ;;  %vm40_vm0 = vcmask 261120   ;;  %vm70_vm1 = vcmask 113664  }
   0x6   :  { %59 = vmatpush.msra.mxu0 %v35_v0  ;;  %80 = vmatpush.msra.mxu1 %v35_v0  ;;  %v33_v2 = vld [vmem:[%s162_s1 + $0x8] sm:$0xff]  ;;  %v32_v3 = vld [vmem:[%s162_s1] sm:$0xff] }
   0x7   :  { %v30_v4 = vld [vmem:[#allocation2] sm:$0xff]  ;;  %v31_v5 = vld [vmem:[#allocation2 + $0x8] sm:$0xff] }
   0x8   :  { %60 = vmatpush.msra.mxu0 %v34_v1  ;;  %81 = vmatpush.msra.mxu1 %v34_v1  ;;  %v87_v6 = vld [vmem:[%s163_s2] ss:$0 sm:$0xff] }
   0xa   :  { %61 = vmatpush.msra.mxu0 %v33_v2  ;;  %82 = vmatpush.msra.mxu1 %v33_v2 }
   0xc   :  { %62 = vmatpush.msra.mxu0 %v32_v3  ;;  %83 = vmatpush.msra.mxu1 %v32_v3 }
   0xd   :  { %78 = vmatmul.msk.f32.vlgmr.msra.gmra.mxu0 %vm40_vm0, %v30_v4  ;;  %79 = vmatmul.msk.f32.vlgmr.msra.gmra.mxu1 %vm40_vm0, %v31_v5 }
  0x8a   :  { %v64_v7 = vpop.f32.mrf.mxu0  ;;  %v67_v8 = vpop.f32.mrf.mxu1 }
  0x8b   :  { %v65_v9 = vadd.f32 %v87_v6, %v64_v7  ;;  %v68_v10 = vadd.f32 %v87_v6, %v67_v8 }
  0x8d   :  { %71 = vst.msk [vmem:[%s164_s3] sm:$0xff] %vm70_vm1, %v65_v9 }
  0x8e   :  { %72 = vst.msk [vmem:[%s164_s3 + $0x8] sm:$0xff] %vm70_vm1, %v68_v10 }
  0x8f   :  { %77 = vsyncpa [#allocation3], 1 }

// kernel: rnn_forward_sequence.4
= control target key start
LH: loop header
LB: loop body
LE: loop exit
PB: predicated region body
PF: predicated region fallthrough
CT: control target
= control target key end

     0   :  { %vm34_vm0 = vcmask 1045504   ;;  %vm22_vm1 = vcmask 107520   ;;  %s730_s0 = inlined_call_operand.vmem [shape: f32[8,2,14], index: 0, kind: input, shape index: {}]   ;;  %s731_s1 = inlined_call_operand.vmem [shape: f32[2,14], index: 1, kind: input, shape index: {}]   ;;  %s732_s2 = inlined_call_operand.vmem [shape: f32[14,14], index: 2, kind: input, shape index: {}]   ;;  %s733_s3 = inlined_call_operand.vmem [shape: f32[8,2,14], index: 3, kind: output, shape index: {0}]   ;;  %s734_s4 = inlined_call_operand.hbm [shape: f32[2,14], index: 4, kind: output, shape index: {1}]  }
   0x1   :  { %v29_v0 = vld [vmem:[%s732_s2 + $0x8] sm:$0x3f]  ;;  %v611_v1 = vld [vmem:[%s732_s2] sm:$0xff] }
   0x2   :  { %v21_v2 = vld [vmem:[%s731_s1] sm:$0x3]  ;;  %482 = vmatpush.msk.msra.mxu0 %vm34_vm0, %v29_v0 }
   0x3   :  { %10 = vsyncpa [#allocation4], 0  ;;  %23 = vst.msk [vmem:[#allocation2] sm:$0x3] %vm22_vm1, %v21_v2  ;;  %vm30_vm2 = vcmask 113664   ;;  %s471_s14 = sshll.u32 %s734_s4, 4  ;;  %s472_s14 = int_to_ptr.hbm [resolvable:$true] %s471_s14 }
   0x4   :  { %53 = vmatpush.msra.mxu0 %v611_v1  ;;  %v27_v4 = vld [vmem:[%s730_s0] sm:$0x3]  ;;  %v85_v5 = vld [vmem:[%s732_s2 + $0x8] sm:$0x3f]  ;;  %v486_v22 = vld [vmem:[%s730_s0 + $0x2] sm:$0x3] }
   0x5   :  { %487 = vmatpush.msk.msra.mxu1 %vm34_vm0, %v85_v5  ;;  %v139_v23 = vld [vmem:[%s732_s2 + $0x8] sm:$0x3f]  ;;  %v491_v40 = vld [vmem:[%s730_s0 + $0x4] sm:$0x3]  ;;  %v496_v58 = vld [vmem:[%s730_s0 + $0x6] sm:$0x3] }
   0x6   :  { %492 = vmatpush.msk.msra.mxu2 %vm34_vm0, %v139_v23  ;;  %v193_v41 = vld [vmem:[%s732_s2 + $0x8] sm:$0x3f] }
   0x7   :  { %107 = vmatpush.msra.mxu1 %v611_v1  ;;  %497 = vmatpush.msk.msra.mxu3 %vm34_vm0, %v193_v41  ;;  %v247_v59 = vld [vmem:[%s732_s2 + $0x8] sm:$0x3f] }
   0x8   :  { %161 = vmatpush.msra.mxu2 %v611_v1  ;;  %502 = vmatpush.msk.msrb.mxu0 %vm34_vm0, %v247_v59 }
   0x9   :  { %215 = vmatpush.msra.mxu3 %v611_v1 }
   0xa   :  { %v24_v3 = vld [vmem:[#allocation2] sm:$0x3]  ;;  %269 = vmatpush.msrb.mxu0 %v611_v1 }
   0xb   :  { %26 = vst.msk [vmem:[%s733_s3] sm:$0x3] %vm22_vm1, %v24_v3  ;;  %483 = vmatmul.msk.f32.vlgmr.msra.gmra.mxu0 %vm30_vm2, %v24_v3 }
  0x88   :  { %v55_v6 = vpop.f32.mrf.mxu0 }
  0x89   :  { %v58_v7 = vadd.f32 %v55_v6, %v27_v4 }
  0x8b   :  { %v484_v8 = vmul.f32 -1.442695, %v58_v7 }
  0x8d   :  { %521 = vpow2.f32 %v484_v8 }
  0x93   :  { %v522_v9 = vpop.eup %521 }
  0x94   :  { %v62_v10 = vadd.f32 1.0, %v522_v9 }
  0x96   :  { %523 = vrcp.f32 %v62_v10  ;;  %v74_v14 = vand.u32 2147483648, %v62_v10  ;;  %v72_v16 = vand.u32 2147483647, %v62_v10  ;;  %vm68_vm4 = vweird.f32 %v62_v10 }
  0x98   :  { %v75_v18 = vor.u32 1.1754944e-38, %v74_v14  ;;  %vm73_vm6 = vcmp.eq.f32.partialorder %v72_v16, 8.507059e+37  ;;  %v301_v14 = vld [vmem:[%s732_s2 + $0x8] sm:$0x3f] }
  0x99   :  { %507 = vmatpush.msk.msrb.mxu1 %vm34_vm0, %v301_v14 }
  0x9b   :  { %323 = vmatpush.msrb.mxu1 %v611_v1 }
  0x9c   :  { %v524_v11 = vpop.eup %523 }
  0x9d   :  { %v64_v12 = vmul.f32 %v524_v11, %v62_v10  ;;  %vm69_vm3 = vweird.f32 %v524_v11 }
  0x9e   :  { %vm70_vm5 = vmor %vm68_vm4, %vm69_vm3 }
  0x9f   :  { %v65_v13 = vsub.f32 1.0, %v64_v12 }
  0xa1   :  { %v66_v15 = vmul.f32 %v524_v11, %v65_v13  ;;  %v501_v13 = vld [vmem:[%s730_s0 + $0x8] sm:$0x3] }
  0xa3   :  { %v67_v17 = vadd.f32 %v524_v11, %v66_v15 }
  0xa5   :  { %v71_v19 = vsel %vm70_vm5, %v524_v11, %v67_v17 }
  0xa6   :  { %v76_v20 = vsel %vm73_vm6, %v75_v18, %v71_v19 }
  0xa7   :  { %78 = vst.msk [vmem:[#allocation2] sm:$0x3] %vm22_vm1, %v76_v20 }
  0xae   :  { %v79_v21 = vld [vmem:[#allocation2] sm:$0x3] }
  0xaf   :  { %485 = vst.msk [vmem:[%s733_s3 + $0x2] sm:$0x3] %vm22_vm1, %v79_v21  ;;  %488 = vmatmul.msk.f32.vlgmr.msra.gmra.mxu1 %vm30_vm2, %v79_v21 }
 0x12c   :  { %v109_v24 = vpop.f32.mrf.mxu1 }
 0x12d   :  { %v112_v25 = vadd.f32 %v486_v22, %v109_v24 }
 0x12f   :  { %v489_v26 = vmul.f32 -1.442695, %v112_v25 }
 0x131   :  { %525 = vpow2.f32 %v489_v26 }
 0x137   :  { %v526_v27 = vpop.eup %525 }
 0x138   :  { %v116_v28 = vadd.f32 1.0, %v526_v27 }
 0x13a   :  { %527 = vrcp.f32 %v116_v28  ;;  %v128_v32 = vand.u32 2147483648, %v116_v28  ;;  %v126_v34 = vand.u32 2147483647, %v116_v28  ;;  %vm122_vm8 = vweird.f32 %v116_v28 }
 0x13c   :  { %v129_v36 = vor.u32 1.1754944e-38, %v128_v32  ;;  %vm127_vm10 = vcmp.eq.f32.partialorder %v126_v34, 8.507059e+37  ;;  %v355_v32 = vld [vmem:[%s732_s2 + $0x8] sm:$0x3f] }
 0x13d   :  { %512 = vmatpush.msk.msrb.mxu2 %vm34_vm0, %v355_v32 }
 0x13f   :  { %377 = vmatpush.msrb.mxu2 %v611_v1 }
 0x140   :  { %v528_v29 = vpop.eup %527 }
 0x141   :  { %v118_v30 = vmul.f32 %v528_v29, %v116_v28  ;;  %vm123_vm7 = vweird.f32 %v528_v29 }
 0x142   :  { %vm124_vm9 = vmor %vm122_vm8, %vm123_vm7 }
 0x143   :  { %v119_v31 = vsub.f32 1.0, %v118_v30 }
 0x145   :  { %v120_v33 = vmul.f32 %v528_v29, %v119_v31  ;;  %v506_v31 = vld [vmem:[%s730_s0 + $0xa] sm:$0x3] }
 0x147   :  { %v121_v35 = vadd.f32 %v528_v29, %v120_v33 }
 0x149   :  { %v125_v37 = vsel %vm124_vm9, %v528_v29, %v121_v35 }
 0x14a   :  { %v130_v38 = vsel %vm127_vm10, %v129_v36, %v125_v37 }
 0x14b   :  { %132 = vst.msk [vmem:[#allocation2] sm:$0x3] %vm22_vm1, %v130_v38 }
 0x152   :  { %v133_v39 = vld [vmem:[#allocation2] sm:$0x3] }
 0x153   :  { %490 = vst.msk [vmem:[%s733_s3 + $0x4] sm:$0x3] %vm22_vm1, %v133_v39  ;;  %493 = vmatmul.msk.f32.vlgmr.msra.gmra.mxu2 %vm30_vm2, %v133_v39 }
 0x1d6   :  { %v163_v42 = vpop.f32.mrf.mxu2 }
 0x1d7   :  { %v166_v43 = vadd.f32 %v491_v40, %v163_v42 }
 0x1d9   :  { %v494_v44 = vmul.f32 -1.442695, %v166_v43 }
 0x1db   :  { %529 = vpow2.f32 %v494_v44 }
 0x1e1   :  { %v530_v45 = vpop.eup %529 }
 0x1e2   :  { %v170_v46 = vadd.f32 1.0, %v530_v45 }
 0x1e4   :  { %531 = vrcp.f32 %v170_v46  ;;  %v182_v50 = vand.u32 2147483648, %v170_v46  ;;  %v180_v52 = vand.u32 2147483647, %v170_v46  ;;  %vm176_vm12 = vweird.f32 %v170_v46 }
 0x1e6   :  { %v183_v54 = vor.u32 1.1754944e-38, %v182_v50  ;;  %vm181_vm14 = vcmp.eq.f32.partialorder %v180_v52, 8.507059e+37  ;;  %v409_v50 = vld [vmem:[%s732_s2 + $0x8] sm:$0x3f] }
 0x1e7   :  { %517 = vmatpush.msk.msrb.mxu3 %vm34_vm0, %v409_v50 }
 0x1e9   :  { %431 = vmatpush.msrb.mxu3 %v611_v1 }
 0x1ea   :  { %v532_v47 = vpop.eup %531 }
 0x1eb   :  { %v172_v48 = vmul.f32 %v532_v47, %v170_v46  ;;  %vm177_vm11 = vweird.f32 %v532_v47 }
 0x1ec   :  { %vm178_vm13 = vmor %vm176_vm12, %vm177_vm11 }
 0x1ed   :  { %v173_v49 = vsub.f32 1.0, %v172_v48 }
 0x1ef   :  { %v174_v51 = vmul.f32 %v532_v47, %v173_v49  ;;  %v511_v49 = vld [vmem:[%s730_s0 + $0xc] sm:$0x3] }
 0x1f1   :  { %v175_v53 = vadd.f32 %v532_v47, %v174_v51 }
 0x1f3   :  { %v179_v55 = vsel %vm178_vm13, %v532_v47, %v175_v53 }
 0x1f4   :  { %v184_v56 = vsel %vm181_vm14, %v183_v54, %v179_v55 }
 0x1f5   :  { %186 = vst.msk [vmem:[#allocation2] sm:$0x3] %vm22_vm1, %v184_v56 }
 0x1fc   :  { %v187_v57 = vld [vmem:[#allocation2] sm:$0x3] }
 0x1fd   :  { %495 = vst.msk [vmem:[%s733_s3 + $0x6] sm:$0x3] %vm22_vm1, %v187_v57  ;;  %498 = vmatmul.msk.f32.vlgmr.msra.gmra.mxu3 %vm30_vm2, %v187_v57 }
 0x280   :  { %v217_v60 = vpop.f32.mrf.mxu3 }
 0x281   :  { %v220_v61 = vadd.f32 %v496_v58, %v217_v60 }
 0x283   :  { %v499_v62 = vmul.f32 -1.442695, %v220_v61 }
 0x285   :  { %533 = vpow2.f32 %v499_v62 }
 0x28b   :  { %v534_v63 = vpop.eup %533 }
 0x28c   :  { %v224_v0 = vadd.f32 1.0, %v534_v63 }
 0x28e   :  { %535 = vrcp.f32 %v224_v0  ;;  %v236_v5 = vand.u32 2147483648, %v224_v0  ;;  %v234_v7 = vand.u32 2147483647, %v224_v0  ;;  %vm230_vm3 = vweird.f32 %v224_v0 }
 0x290   :  { %v237_v9 = vor.u32 1.1754944e-38, %v236_v5  ;;  %vm235_vm5 = vcmp.eq.f32.partialorder %v234_v7, 8.507059e+37 }
 0x294   :  { %v536_v2 = vpop.eup %535 }
 0x295   :  { %v226_v3 = vmul.f32 %v536_v2, %v224_v0  ;;  %vm231_vm15 = vweird.f32 %v536_v2 }
 0x296   :  { %vm232_vm4 = vmor %vm230_vm3, %vm231_vm15 }
 0x297   :  { %v227_v4 = vsub.f32 1.0, %v226_v3  ;;  %v516_v3 = vld [vmem:[%s730_s0 + $0xe] sm:$0x3]  ;;  %s579_s0 = smov [#allocation3]  }
 0x299   :  { %v228_v6 = vmul.f32 %v536_v2, %v227_v4 }
 0x29b   :  { %v229_v8 = vadd.f32 %v536_v2, %v228_v6 }
 0x29d   :  { %v233_v10 = vsel %vm232_vm4, %v536_v2, %v229_v8 }
 0x29e   :  { %v238_v11 = vsel %vm235_vm5, %v237_v9, %v233_v10 }
 0x29f   :  { %240 = vst.msk [vmem:[#allocation2] sm:$0x3] %vm22_vm1, %v238_v11 }
 0x2a6   :  { %v241_v12 = vld [vmem:[#allocation2] sm:$0x3] }
 0x2a7   :  { %500 = vst.msk [vmem:[%s733_s3 + $0x8] sm:$0x3] %vm22_vm1, %v241_v12  ;;  %503 = vmatmul.msk.f32.vlgmr.msrb.gmra.mxu0 %vm30_vm2, %v241_v12 }
 0x324   :  { %v271_v15 = vpop.f32.mrf.mxu0 }
 0x325   :  { %v274_v16 = vadd.f32 %v501_v13, %v271_v15 }
 0x327   :  { %v504_v17 = vmul.f32 -1.442695, %v274_v16 }
 0x329   :  { %537 = vpow2.f32 %v504_v17 }
 0x32f   :  { %v538_v18 = vpop.eup %537 }
 0x330   :  { %v278_v19 = vadd.f32 1.0, %v538_v18 }
 0x332   :  { %539 = vrcp.f32 %v278_v19  ;;  %v290_v23 = vand.u32 2147483648, %v278_v19  ;;  %v288_v25 = vand.u32 2147483647, %v278_v19  ;;  %vm284_vm7 = vweird.f32 %v278_v19 }
 0x334   :  { %v291_v27 = vor.u32 1.1754944e-38, %v290_v23  ;;  %vm289_vm9 = vcmp.eq.f32.partialorder %v288_v25, 8.507059e+37 }
 0x338   :  { %v540_v20 = vpop.eup %539 }
 0x339   :  { %v280_v21 = vmul.f32 %v540_v20, %v278_v19  ;;  %vm285_vm6 = vweird.f32 %v540_v20 }
 0x33a   :  { %vm286_vm8 = vmor %vm284_vm7, %vm285_vm6 }
 0x33b   :  { %v281_v22 = vsub.f32 1.0, %v280_v21 }
 0x33d   :  { %v282_v24 = vmul.f32 %v540_v20, %v281_v22 }
 0x33f   :  { %v283_v26 = vadd.f32 %v540_v20, %v282_v24 }
 0x341   :  { %v287_v28 = vsel %vm286_vm8, %v540_v20, %v283_v26 }
 0x342   :  { %v292_v29 = vsel %vm289_vm9, %v291_v27, %v287_v28 }
 0x343   :  { %294 = vst.msk [vmem:[#allocation2] sm:$0x3] %vm22_vm1, %v292_v29 }
 0x34a   :  { %v295_v30 = vld [vmem:[#allocation2] sm:$0x3] }
 0x34b   :  { %505 = vst.msk [vmem:[%s733_s3 + $0xa] sm:$0x3] %vm22_vm1, %v295_v30  ;;  %508 = vmatmul.msk.f32.vlgmr.msrb.gmra.mxu1 %vm30_vm2, %v295_v30 }
 0x3c8   :  { %v325_v33 = vpop.f32.mrf.mxu1 }
 0x3c9   :  { %v328_v34 = vadd.f32 %v506_v31, %v325_v33 }
 0x3cb   :  { %v509_v35 = vmul.f32 -1.442695, %v328_v34 }
 0x3cd   :  { %541 = vpow2.f32 %v509_v35 }
 0x3d3   :  { %v542_v36 = vpop.eup %541 }
 0x3d4   :  { %v332_v37 = vadd.f32 1.0, %v542_v36 }
 0x3d6   :  { %543 = vrcp.f32 %v332_v37  ;;  %v344_v41 = vand.u32 2147483648, %v332_v37  ;;  %v342_v43 = vand.u32 2147483647, %v332_v37  ;;  %vm338_vm11 = vweird.f32 %v332_v37 }
 0x3d8   :  { %v345_v45 = vor.u32 1.1754944e-38, %v344_v41  ;;  %vm343_vm13 = vcmp.eq.f32.partialorder %v342_v43, 8.507059e+37 }
 0x3dc   :  { %v544_v38 = vpop.eup %543 }
 0x3dd   :  { %v334_v39 = vmul.f32 %v544_v38, %v332_v37  ;;  %vm339_vm10 = vweird.f32 %v544_v38 }
 0x3de   :  { %vm340_vm12 = vmor %vm338_vm11, %vm339_vm10 }
 0x3df   :  { %v335_v40 = vsub.f32 1.0, %v334_v39 }
 0x3e1   :  { %v336_v42 = vmul.f32 %v544_v38, %v335_v40 }
 0x3e3   :  { %v337_v44 = vadd.f32 %v544_v38, %v336_v42 }
 0x3e5   :  { %v341_v46 = vsel %vm340_vm12, %v544_v38, %v337_v44 }
 0x3e6   :  { %v346_v47 = vsel %vm343_vm13, %v345_v45, %v341_v46 }
 0x3e7   :  { %348 = vst.msk [vmem:[#allocation2] sm:$0x3] %vm22_vm1, %v346_v47 }
 0x3ee   :  { %v349_v48 = vld [vmem:[#allocation2] sm:$0x3] }
 0x3ef   :  { %510 = vst.msk [vmem:[%s733_s3 + $0xc] sm:$0x3] %vm22_vm1, %v349_v48  ;;  %513 = vmatmul.msk.f32.vlgmr.msrb.gmra.mxu2 %vm30_vm2, %v349_v48 }
 0x472   :  { %v379_v51 = vpop.f32.mrf.mxu2 }
 0x473   :  { %v382_v52 = vadd.f32 %v511_v49, %v379_v51 }
 0x475   :  { %v514_v53 = vmul.f32 -1.442695, %v382_v52 }
 0x477   :  { %545 = vpow2.f32 %v514_v53 }
 0x47d   :  { %v546_v54 = vpop.eup %545 }
 0x47e   :  { %v386_v55 = vadd.f32 1.0, %v546_v54 }
 0x480   :  { %547 = vrcp.f32 %v386_v55  ;;  %v398_v59 = vand.u32 2147483648, %v386_v55  ;;  %v396_v61 = vand.u32 2147483647, %v386_v55  ;;  %vm392_vm15 = vweird.f32 %v386_v55 }
 0x482   :  { %v399_v63 = vor.u32 1.1754944e-38, %v398_v59  ;;  %vm397_vm0 = vcmp.eq.f32.partialorder %v396_v61, 8.507059e+37 }
 0x486   :  { %v548_v56 = vpop.eup %547 }
 0x487   :  { %v388_v57 = vmul.f32 %v548_v56, %v386_v55  ;;  %vm393_vm14 = vweird.f32 %v548_v56 }
 0x488   :  { %vm394_vm3 = vmor %vm392_vm15, %vm393_vm14 }
 0x489   :  { %v389_v58 = vsub.f32 1.0, %v388_v57 }
 0x48b   :  { %v390_v60 = vmul.f32 %v548_v56, %v389_v58 }
 0x48d   :  { %v391_v62 = vadd.f32 %v548_v56, %v390_v60 }
 0x48f   :  { %v395_v0 = vsel %vm394_vm3, %v548_v56, %v391_v62 }
 0x490   :  { %v400_v2 = vsel %vm397_vm0, %v399_v63, %v395_v0 }
 0x491   :  { %402 = vst.msk [vmem:[#allocation2] sm:$0x3] %vm22_vm1, %v400_v2 }
 0x498   :  { %v403_v1 = vld [vmem:[#allocation2] sm:$0x3] }
 0x499   :  { %515 = vst.msk [vmem:[%s733_s3 + $0xe] sm:$0x3] %vm22_vm1, %v403_v1  ;;  %518 = vmatmul.msk.f32.vlgmr.msrb.gmra.mxu3 %vm30_vm2, %v403_v1  ;;  %s469_s3 = sshll.u32 %s579_s0, 4  ;;  %s470_s3 = int_to_ptr.vmem [resolvable:$true] %s469_s3 }
 0x51c   :  { %v433_v4 = vpop.f32.mrf.mxu3 }
 0x51d   :  { %v436_v5 = vadd.f32 %v516_v3, %v433_v4 }
 0x51f   :  { %v519_v6 = vmul.f32 -1.442695, %v436_v5 }
 0x521   :  { %549 = vpow2.f32 %v519_v6 }
 0x527   :  { %v550_v7 = vpop.eup %549 }
 0x528   :  { %v440_v8 = vadd.f32 1.0, %v550_v7 }
 0x52a   :  { %551 = vrcp.f32 %v440_v8  ;;  %v452_v12 = vand.u32 2147483648, %v440_v8  ;;  %v450_v14 = vand.u32 2147483647, %v440_v8  ;;  %vm446_vm2 = vweird.f32 %v440_v8 }
 0x52c   :  { %v453_v16 = vor.u32 1.1754944e-38, %v452_v12  ;;  %vm451_vm6 = vcmp.eq.f32.partialorder %v450_v14, 8.507059e+37 }
 0x530   :  { %v552_v9 = vpop.eup %551 }
 0x531   :  { %v442_v10 = vmul.f32 %v552_v9, %v440_v8  ;;  %vm447_vm4 = vweird.f32 %v552_v9 }
 0x532   :  { %vm448_vm5 = vmor %vm446_vm2, %vm447_vm4 }
 0x533   :  { %v443_v11 = vsub.f32 1.0, %v442_v10 }
 0x535   :  { %v444_v13 = vmul.f32 %v552_v9, %v443_v11 }
 0x537   :  { %v445_v15 = vadd.f32 %v552_v9, %v444_v13 }
 0x539   :  { %v449_v17 = vsel %vm448_vm5, %v552_v9, %v445_v15 }
 0x53a   :  { %v454_v18 = vsel %vm451_vm6, %v453_v16, %v449_v17 }
 0x53b   :  { %456 = vst.msk [vmem:[#allocation2] sm:$0x3] %vm22_vm1, %v454_v18 }
 0x542   :  { %v460_v19 = vld [vmem:[#allocation2] sm:$0x3] }
 0x543   :  { %461 = vst.msk [vmem:[#allocation3] sm:$0x3] %vm22_vm1, %v460_v19 }
 0x544   :  { %474 = dma.vmem_to_hbm [thread:$0]  %s470_s3, 32, %s472_s14, [#allocation4]  }
 0x545   :  { %577 = dma.done.wait [#allocation4], 32  }
 0x546   :  { %578 = vsyncadd [#allocation4], 4294967264 }
 0x547   :  { %481 = vsyncpa [#allocation4], 1 }

</bundles_post_ra>
